<compile_context>
chip_gen: v7x
topology: tpu7x:2x2x1
jax: 0.10.0
libtpu: 0.0.40
codegen_flags: <defaults>
</compile_context>

<pallas_src>
import functools
import math

import jax
import jax.numpy as jnp
from jax.experimental import pallas as pl
from jax.experimental.pallas import tpu as pltpu

BN_EPS = 1e-5


def _mlp_kernel(x_ref, w1_ref, b1_ref, w2_ref, b2_ref, w3_ref, b3_ref, o_ref,
                *, reduce_output: bool, apply_sigmoid: bool):
    # Cast the streamed f32 x tile to bf16 in-register (no extra HBM pass).
    xb = x_ref[...].astype(jnp.bfloat16)

    # Hidden layer 1: (BN-folded) Linear -> ReLU   [Dropout = identity in eval]
    h = jnp.dot(xb, w1_ref[...], preferred_element_type=jnp.float32)
    h = jnp.maximum(h + b1_ref[...], 0.0)

    # Hidden layer 2: (BN-folded) Linear -> ReLU
    h = jnp.dot(h.astype(w2_ref.dtype), w2_ref[...],
                preferred_element_type=jnp.float32)
    h = jnp.maximum(h + b2_ref[...], 0.0)

    # Output layer: Linear -> Sigmoid
    if reduce_output:
        # output_dim == 1: multiply by the w3 row, tile-aligned XLU transpose,
        # then a sublane reduction -> result lands directly in lane-dense
        # (1, tb) form so the store is unmasked full-lane vst's.
        prod_t = jnp.transpose(h * w3_ref[...])                  # (hidden2, tb)
        y = jnp.sum(prod_t, axis=0, keepdims=True) + b3_ref[...]  # (1, tb)
    else:
        y = jnp.dot(h.astype(w3_ref.dtype), w3_ref[...],
                    preferred_element_type=jnp.float32) + b3_ref[...]
    o_ref[...] = jax.nn.sigmoid(y) if apply_sigmoid else y

    # TODO(synk): training-mode dropout / batch-statistics BatchNorm and the
    # leaky_relu/elu/tanh activation options are not implemented (forward pass
    # matches module.eval() with activation='relu').


def _round_up(n, m):
    return ((n + m - 1) // m) * m


def feedforward_nn_forward(x, params, *, block_rows=2048, multi_class=False):
    """Fused forward pass of FeedForwardNN (input_dim -> 128 -> 128 -> output_dim)."""
    batch, input_dim = x.shape
    hidden1 = params["w1"].shape[1]
    hidden2 = params["w2"].shape[1]
    output_dim = params["w3"].shape[1]

    if batch == 0:  # degenerate batch guard
        return jnp.zeros((0, output_dim), jnp.float32)

    # ---- one-time BN(eval) fold into the Linear weights/biases (tiny vector ops) ----
    s1 = params["g1"][0] * jax.lax.rsqrt(params["rv1"][0] + BN_EPS)
    w1 = (params["w1"] * s1[None, :]).astype(jnp.bfloat16)
    b1 = ((params["b1"][0] - params["rm1"][0]) * s1 + params["bt1"][0]).reshape(1, hidden1)

    s2 = params["g2"][0] * jax.lax.rsqrt(params["rv2"][0] + BN_EPS)
    w2 = (params["w2"] * s2[None, :]).astype(jnp.bfloat16)
    b2 = ((params["b2"][0] - params["rm2"][0]) * s2 + params["bt2"][0]).reshape(1, hidden2)

    reduce_output = output_dim == 1
    if reduce_output:
        w3 = params["w3"].reshape(1, hidden2).astype(jnp.float32)  # f32 row for VPU path
        b3 = params["b3"].reshape(1, 1).astype(jnp.float32)
    else:
        w3 = params["w3"].astype(jnp.bfloat16)
        b3 = params["b3"].reshape(1, output_dim).astype(jnp.float32)

    # ---- batch tiling -------------------------------------------------------
    # Aim for >= 2 lane-aligned (128) batch tiles when the batch is large enough
    # so dimension_semantics=("parallel",) can shard them over both v7x TCs.
    two_tc_rows = _round_up(pl.cdiv(batch, 2), 128)
    tb = min(block_rows, max(128, two_tc_rows))
    if tb >= batch:
        # Single tile: size it exactly (8-row sublane granule) -> the x DMA never
        # over-reads and the output block equals the full output slab.
        tb = _round_up(batch, 8)
    num_tiles = pl.cdiv(batch, tb)
    padded = num_tiles * tb  # grid over-covers the ragged tail; no wrapper pad/copy

    const2 = lambda i: (0, 0)      # params resident across all grid steps
    stream_rows = lambda i: (i, 0)  # x streams over the batch grid

    if reduce_output:
        # lane-dense output slab: (1, padded), each step writes a full (1, tb) row
        out_shape = jax.ShapeDtypeStruct((1, padded), jnp.float32)
        out_spec = pl.BlockSpec((1, tb), lambda i: (0, i))
    else:
        out_shape = jax.ShapeDtypeStruct((padded, output_dim), jnp.float32)
        out_spec = pl.BlockSpec((tb, output_dim), stream_rows)

    flops = 2 * batch * (input_dim * hidden1 + hidden1 * hidden2 + hidden2 * output_dim)
    bytes_accessed = (x.size * 4 + batch * output_dim * 4
                      + w1.size * 2 + w2.size * 2
                      + w3.size * w3.dtype.itemsize
                      + (b1.size + b2.size + b3.size) * 4)

    out = pl.pallas_call(
        functools.partial(_mlp_kernel,
                          reduce_output=reduce_output,
                          apply_sigmoid=not multi_class),
        out_shape=out_shape,
        grid=(num_tiles,),
        in_specs=[
            # x streams in f32; cast to bf16 happens in-kernel.
            # (If the input DMA is ever exposed on tiny batches, add
            #  pipeline_mode=pl.Buffered(3) here.)
            pl.BlockSpec((tb, input_dim), stream_rows),
            pl.BlockSpec(w1.shape, const2),
            pl.BlockSpec(b1.shape, const2),
            pl.BlockSpec(w2.shape, const2),
            pl.BlockSpec(b2.shape, const2),
            pl.BlockSpec(w3.shape, const2),
            pl.BlockSpec(b3.shape, const2),
        ],
        out_specs=out_spec,
        compiler_params=pltpu.CompilerParams(
            dimension_semantics=("parallel",)),
        cost_estimate=pl.CostEstimate(
            flops=flops,
            transcendentals=batch * output_dim,
            bytes_accessed=bytes_accessed),
    )(x, w1, b1, w2, b2, w3, b3)

    if reduce_output:
        return out.reshape(padded, 1)[:batch]
    return out[:batch]


def init_params(key, input_dim, hidden_dims, output_dim):
    """He (kaiming_normal_, fan_in, relu) init; biases = 0.
    BatchNorm: gamma=1, beta=0, running_mean=0, running_var=1 (PyTorch defaults)."""
    dims = [input_dim] + list(hidden_dims) + [output_dim]
    keys = jax.random.split(key, len(dims) - 1)
    params = {}
    for i, (fan_in, fan_out) in enumerate(zip(dims[:-1], dims[1:]), start=1):
        std = math.sqrt(2.0 / fan_in)
        # stored pre-transposed as (in, out)
        params[f"w{i}"] = (std * jax.random.normal(keys[i - 1], (fan_in, fan_out))).astype(jnp.float32)
        params[f"b{i}"] = jnp.zeros((1, fan_out), jnp.float32)
    for i, h in enumerate(hidden_dims, start=1):
        params[f"g{i}"] = jnp.ones((1, h), jnp.float32)    # BN weight (gamma)
        params[f"bt{i}"] = jnp.zeros((1, h), jnp.float32)  # BN bias (beta)
        params[f"rm{i}"] = jnp.zeros((1, h), jnp.float32)  # running mean
        params[f"rv{i}"] = jnp.ones((1, h), jnp.float32)   # running var
    return params


def reference_forward(x, params):
    """Plain-JAX f32 reference (un-folded BN) for correctness checking."""
    h = x @ params["w1"] + params["b1"]
    h = (h - params["rm1"]) / jnp.sqrt(params["rv1"] + BN_EPS) * params["g1"] + params["bt1"]
    h = jnp.maximum(h, 0.0)
    h = h @ params["w2"] + params["b2"]
    h = (h - params["rm2"]) / jnp.sqrt(params["rv2"] + BN_EPS) * params["g2"] + params["bt2"]
    h = jnp.maximum(h, 0.0)
    y = h @ params["w3"] + params["b3"]
    return jax.nn.sigmoid(y)


if __name__ == "__main__":
    input_dim = 16
    hidden_dims = [128, 128]
    output_dim = 1
    batch = 8

    key = jax.random.PRNGKey(0)
    kx, kp = jax.random.split(key)
    x = jax.random.normal(kx, (batch, input_dim), dtype=jnp.float32)
    params = init_params(kp, input_dim, hidden_dims, output_dim)

    out = feedforward_nn_forward(x, params)
    out = jax.block_until_ready(out)

    ref = reference_forward(x, params)
    assert out.shape == (batch, output_dim)
    # bf16 matmul operands (f32 accumulation) vs f32 reference -> loose-ish tolerance
    assert jnp.allclose(out, ref, atol=2e-2, rtol=2e-2), "mismatch vs reference"
    print("KERNEL_OK")
</pallas_src>

<mosaic_0001>
module attributes {stable_mosaic.version = 11 : i64} {
  func.func @_mlp_kernel(%arg0: i32, %arg1: memref<8x16xf32, #tpu.memory_space<vmem>>, %arg2: memref<16x128xbf16, #tpu.memory_space<vmem>>, %arg3: memref<1x128xf32, #tpu.memory_space<vmem>>, %arg4: memref<128x128xbf16, #tpu.memory_space<vmem>>, %arg5: memref<1x128xf32, #tpu.memory_space<vmem>>, %arg6: memref<1x128xf32, #tpu.memory_space<vmem>>, %arg7: memref<1x1xf32, #tpu.memory_space<vmem>>, %arg8: memref<1x8xf32, #tpu.memory_space<vmem>>) attributes {dimension_semantics = [#tpu.dimension_semantics<parallel>], iteration_bounds = array<i64: 1>, scalar_prefetch = 0 : i64, scratch_operands = 0 : i64, tpu.core_type = #tpu.core_type<tc>, window_params = [{transform_indices = @transform_0, window_bounds = array<i64: 8, 16>}, {pipeline_mode = #tpu.pipeline_mode<synchronous>, transform_indices = @transform_1, window_bounds = array<i64: 16, 128>}, {pipeline_mode = #tpu.pipeline_mode<synchronous>, transform_indices = @transform_2, window_bounds = array<i64: 1, 128>}, {pipeline_mode = #tpu.pipeline_mode<synchronous>, transform_indices = @transform_3, window_bounds = array<i64: 128, 128>}, {pipeline_mode = #tpu.pipeline_mode<synchronous>, transform_indices = @transform_4, window_bounds = array<i64: 1, 128>}, {pipeline_mode = #tpu.pipeline_mode<synchronous>, transform_indices = @transform_5, window_bounds = array<i64: 1, 128>}, {pipeline_mode = #tpu.pipeline_mode<synchronous>, transform_indices = @transform_6, window_bounds = array<i64: 1, 1>}, {transform_indices = @transform_7, window_bounds = array<i64: 1, 8>}]} {
    %c0 = arith.constant 0 : index
    %c0_0 = arith.constant 0 : index
    %0 = vector.load %arg1[%c0, %c0_0] : memref<8x16xf32, #tpu.memory_space<vmem>>, vector<8x16xf32>
    %1 = arith.truncf %0 : vector<8x16xf32> to vector<8x16xbf16>
    %c0_1 = arith.constant 0 : index
    %c0_2 = arith.constant 0 : index
    %2 = vector.load %arg2[%c0_1, %c0_2] : memref<16x128xbf16, #tpu.memory_space<vmem>>, vector<16x128xbf16>
    %cst = arith.constant dense<0.000000e+00> : vector<8x128xf32>
    %3 = tpu.matmul %1, %2, %cst {dimension_numbers = #tpu.dot_dimension_numbers<[1], [0], [0], [1], [0, 0, 1, 1], [], []>} : vector<8x16xbf16>, vector<16x128xbf16>, vector<8x128xf32> -> vector<8x128xf32>
    %c0_3 = arith.constant 0 : index
    %c0_4 = arith.constant 0 : index
    %4 = vector.load %arg3[%c0_3, %c0_4] : memref<1x128xf32, #tpu.memory_space<vmem>>, vector<1x128xf32>
    %5 = vector.broadcast %4 : vector<1x128xf32> to vector<8x128xf32>
    %6 = arith.addf %3, %5 : vector<8x128xf32>
    %cst_5 = arith.constant 0.000000e+00 : f32
    %7 = vector.broadcast %cst_5 : f32 to vector<8x128xf32>
    %8 = arith.maximumf %6, %7 : vector<8x128xf32>
    %9 = arith.truncf %8 : vector<8x128xf32> to vector<8x128xbf16>
    %c0_6 = arith.constant 0 : index
    %c0_7 = arith.constant 0 : index
    %10 = vector.load %arg4[%c0_6, %c0_7] : memref<128x128xbf16, #tpu.memory_space<vmem>>, vector<128x128xbf16>
    %cst_8 = arith.constant dense<0.000000e+00> : vector<8x128xf32>
    %11 = tpu.matmul %9, %10, %cst_8 {dimension_numbers = #tpu.dot_dimension_numbers<[1], [0], [0], [1], [0, 0, 1, 1], [], []>} : vector<8x128xbf16>, vector<128x128xbf16>, vector<8x128xf32> -> vector<8x128xf32>
    %c0_9 = arith.constant 0 : index
    %c0_10 = arith.constant 0 : index
    %12 = vector.load %arg5[%c0_9, %c0_10] : memref<1x128xf32, #tpu.memory_space<vmem>>, vector<1x128xf32>
    %13 = vector.broadcast %12 : vector<1x128xf32> to vector<8x128xf32>
    %14 = arith.addf %11, %13 : vector<8x128xf32>
    %cst_11 = arith.constant 0.000000e+00 : f32
    %15 = vector.broadcast %cst_11 : f32 to vector<8x128xf32>
    %16 = arith.maximumf %14, %15 : vector<8x128xf32>
    %c0_12 = arith.constant 0 : index
    %c0_13 = arith.constant 0 : index
    %17 = vector.load %arg6[%c0_12, %c0_13] : memref<1x128xf32, #tpu.memory_space<vmem>>, vector<1x128xf32>
    %18 = vector.broadcast %17 : vector<1x128xf32> to vector<8x128xf32>
    %19 = arith.mulf %16, %18 : vector<8x128xf32>
    %20 = tpu.transpose %19, [1, 0] : vector<8x128xf32> -> vector<128x8xf32>
    %cst_14 = arith.constant dense<0.000000e+00> : vector<8xf32>
    %21 = vector.multi_reduction <add>, %20, %cst_14 [0] : vector<128x8xf32> to vector<8xf32>
    %22 = vector.shape_cast %21 : vector<8xf32> to vector<1x8xf32>
    %c0_15 = arith.constant 0 : index
    %c0_16 = arith.constant 0 : index
    %23 = vector.load %arg7[%c0_15, %c0_16] : memref<1x1xf32, #tpu.memory_space<vmem>>, vector<1x1xf32>
    %24 = vector.broadcast %23 : vector<1x1xf32> to vector<1x8xf32>
    %25 = arith.addf %22, %24 : vector<1x8xf32>
    %26 = arith.negf %25 : vector<1x8xf32>
    %27 = math.exp %26 : vector<1x8xf32>
    %cst_17 = arith.constant 1.000000e+00 : f32
    %28 = vector.broadcast %cst_17 : f32 to vector<1x8xf32>
    %29 = arith.addf %28, %27 : vector<1x8xf32>
    %30 = arith.divf %28, %29 : vector<1x8xf32>
    %c0_18 = arith.constant 0 : index
    %c0_19 = arith.constant 0 : index
    %31 = vector.load %arg8[%c0_18, %c0_19] : memref<1x8xf32, #tpu.memory_space<vmem>>, vector<1x8xf32>
    tpu.vector_store %arg8[%c0_18, %c0_19], %30 {strides = array<i32>} : memref<1x8xf32, #tpu.memory_space<vmem>>, vector<1x8xf32>,
    return
  }
  func.func @transform_0(%arg0: i32) -> (i32, i32) {
    %c0_i32 = arith.constant 0 : i32
    %c0_i32_0 = arith.constant 0 : i32
    return %arg0, %c0_i32 : i32, i32
  }
  func.func @transform_1(%arg0: i32) -> (i32, i32) {
    %c0_i32 = arith.constant 0 : i32
    %c0_i32_0 = arith.constant 0 : i32
    %c0_i32_1 = arith.constant 0 : i32
    return %c0_i32, %c0_i32_0 : i32, i32
  }
  func.func @transform_2(%arg0: i32) -> (i32, i32) {
    %c0_i32 = arith.constant 0 : i32
    %c0_i32_0 = arith.constant 0 : i32
    %c0_i32_1 = arith.constant 0 : i32
    return %c0_i32, %c0_i32_0 : i32, i32
  }
  func.func @transform_3(%arg0: i32) -> (i32, i32) {
    %c0_i32 = arith.constant 0 : i32
    %c0_i32_0 = arith.constant 0 : i32
    %c0_i32_1 = arith.constant 0 : i32
    return %c0_i32, %c0_i32_0 : i32, i32
  }
  func.func @transform_4(%arg0: i32) -> (i32, i32) {
    %c0_i32 = arith.constant 0 : i32
    %c0_i32_0 = arith.constant 0 : i32
    %c0_i32_1 = arith.constant 0 : i32
    return %c0_i32, %c0_i32_0 : i32, i32
  }
  func.func @transform_5(%arg0: i32) -> (i32, i32) {
    %c0_i32 = arith.constant 0 : i32
    %c0_i32_0 = arith.constant 0 : i32
    %c0_i32_1 = arith.constant 0 : i32
    return %c0_i32, %c0_i32_0 : i32, i32
  }
  func.func @transform_6(%arg0: i32) -> (i32, i32) {
    %c0_i32 = arith.constant 0 : i32
    %c0_i32_0 = arith.constant 0 : i32
    %c0_i32_1 = arith.constant 0 : i32
    return %c0_i32, %c0_i32_0 : i32, i32
  }
  func.func @transform_7(%arg0: i32) -> (i32, i32) {
    %c0_i32 = arith.constant 0 : i32
    %c0_i32_0 = arith.constant 0 : i32
    return %c0_i32, %arg0 : i32, i32
  }
}

</mosaic_0001>

<bundles_post_ra>
// kernel: tpu_custom_call.1
= control target key start
LH: loop header
LB: loop body
LE: loop exit
PB: predicated region body
PF: predicated region fallthrough
CT: control target
= control target key end

     0   :  { %s656_s0 = inlined_call_operand.hbm [shape: f32[8,16], index: 0, kind: input, shape index: {}]   ;;  %s657_s1 = inlined_call_operand.hbm [shape: bf16[16,128], index: 1, kind: input, shape index: {}]   ;;  %s658_s2 = inlined_call_operand.vmem [shape: f32[1,128], index: 2, kind: input, shape index: {}]   ;;  %s659_s3 = inlined_call_operand.hbm [shape: bf16[128,128], index: 3, kind: input, shape index: {}]   ;;  %s660_s4 = inlined_call_operand.vmem [shape: f32[1,128], index: 4, kind: input, shape index: {}]   ;;  %s661_s5 = inlined_call_operand.vmem [shape: f32[1,128], index: 5, kind: input, shape index: {}]   ;;  %s662_s6 = inlined_call_operand.<no memory space> [shape: f32[1,1], index: 6, kind: input, shape index: {}]   ;;  %s663_s7 = inlined_call_operand.hbm [shape: f32[1,8], index: 7, kind: output, shape index: {}]  }
   0x1   :  { %v12_v0 = vstv %s662_s6 }
   0x2   :  { %13 = vst [vmem:[#allocation2] sm:$0x1] %v12_v0 }
   0x3   :  { %14 = vsyncpa [#allocation4], 0 }
   0x4   :  { %15 = vsyncpa [#allocation7], 0 }
   0x5   :  { %16 = vsyncpa [#allocation5], 0  ;;  %s525_s26 = smov [#allocation6]   ;;  %s431_s30 = scalar_lea.hbm %s657_s1, 128 }
   0x6   :  { %s32_s27 = sshll.u32 %s525_s26, 4  ;;  %p432_p0 = scmp.ne.s32.totalorder %s657_s1, %s431_s30  ;;  %s33_s27 = int_to_ptr.vmem [resolvable:$true] %s32_s27 }
   0x7   :  { %p435_p1 = scmp.lt.u32.totalorder %s431_s30, %s657_s1 }
   0x9   :  { %p437_p2 = pnand %p435_p1, %p432_p0 }
   0xb   :  { %440 = shalt.err (!%p437_p2)
}
   0xc   :  { %s441_s6 = scalar_lea.vmem %s33_s27, 128  ;;  %p446_p4 = scmp.lt.s32.totalorder %s33_s27, %s33_s27 }
   0xd   :  { %p442_p3 = scmp.ne.s32.totalorder %s33_s27, %s441_s6  ;;  %p447_p5 = scmp.lt.s32.totalorder %s441_s6, %s441_s6 }
   0xf   :  { %p448_p6 = por %p447_p5, %p446_p4 }
  0x11   :  { %p449_p7 = pnand %p448_p6, %p442_p3 }
  0x13   :  { %452 = shalt.err (!%p449_p7)
}
  0x14   :  { %s526_s12 = smov 64   ;;  %s527_s13 = smov 4  }
  0x15   :  { %38 = dma.hbm_to_vmem [thread:$0]  %s657_s1, 128, %s33_s27, [#allocation7], %s526_s12, %s526_s12, %s527_s13  }
  0x16   :  { %s528_s16 = smov [#allocation3]   ;;  %s529_s18 = smov [#allocation8]  }
  0x17   :  { %s23_s17 = sshll.u32 %s528_s16, 4  ;;  %s46_s19 = sshll.u32 %s529_s18, 4  ;;  %s24_s17 = int_to_ptr.vmem [resolvable:$true] %s23_s17  ;;  %s47_s19 = int_to_ptr.vmem [resolvable:$true] %s46_s19 }
  0x18   :  { %s453_s22 = scalar_lea.hbm %s656_s0, 128 }
  0x19   :  { %p454_p8 = scmp.ne.s32.totalorder %s656_s0, %s453_s22  ;;  %p457_p9 = scmp.lt.u32.totalorder %s453_s22, %s656_s0 }
  0x1b   :  { %p459_p10 = pnand %p457_p9, %p454_p8 }
  0x1d   :  { %462 = shalt.err (!%p459_p10)
}
  0x1e   :  { %s463_s1 = scalar_lea.vmem %s24_s17, 128  ;;  %p468_p12 = scmp.lt.s32.totalorder %s24_s17, %s24_s17 }
  0x1f   :  { %p464_p11 = scmp.ne.s32.totalorder %s24_s17, %s463_s1  ;;  %p469_p13 = scmp.lt.s32.totalorder %s463_s1, %s463_s1 }
  0x21   :  { %p470_p0 = por %p469_p13, %p468_p12 }
  0x23   :  { %p471_p1 = pnand %p470_p0, %p464_p11 }
  0x25   :  { %474 = shalt.err (!%p471_p1)
}
  0x26   :  { %26 = dma.hbm_to_vmem [thread:$0]  %s656_s0, 128, %s24_s17, [#allocation4]  }
  0x27   :  { %s475_s8 = scalar_lea.hbm %s659_s3, 1024 }
  0x28   :  { %p476_p2 = scmp.ne.s32.totalorder %s659_s3, %s475_s8  ;;  %p479_p3 = scmp.lt.u32.totalorder %s475_s8, %s659_s3 }
  0x2a   :  { %p481_p4 = pnand %p479_p3, %p476_p2 }
  0x2c   :  { %484 = shalt.err (!%p481_p4)
}
  0x2d   :  { %s485_s14 = scalar_lea.vmem %s47_s19, 1024  ;;  %p490_p6 = scmp.lt.s32.totalorder %s47_s19, %s47_s19 }
  0x2e   :  { %p486_p5 = scmp.ne.s32.totalorder %s47_s19, %s485_s14  ;;  %p491_p7 = scmp.lt.s32.totalorder %s485_s14, %s485_s14 }
  0x30   :  { %p492_p8 = por %p491_p7, %p490_p6 }
  0x32   :  { %p493_p9 = pnand %p492_p8, %p486_p5 }
  0x34   :  { %496 = shalt.err (!%p493_p9)
}
  0x35   :  { %52 = dma.hbm_to_vmem [thread:$0]  %s659_s3, 1024, %s47_s19, [#allocation7], %s526_s12, %s526_s12, %s527_s13  }
  0x36   :  { %519 = dma.done.wait [#allocation4], 128  }
  0x37   :  { %520 = vsyncadd [#allocation4], 4294967168 }
  0x38   :  { %521 = dma.done.wait [#allocation7], 1152  }
  0x39   :  { %522 = vsyncadd [#allocation7], 4294966144  ;;  %v530_v1 = vmov 0.0   ;;  %vm531_vm0 = vmmov 0   ;;  %v418_v2 = vld [vmem:[#allocation6] sm:$0xff]   ;;  %v69_v3 = vld [vmem:[#allocation3] sm:$0xff] }
  0x3a   :  { %382 = vmatprep.subr.bf16.mxu0 %v530_v1  ;;  %384 = vmatprep.mubr.msk.bf16.mxu0 %vm531_vm0, %v530_v1  ;;  %v70_v4 = vpack.c.bf16 %v69_v3, %v69_v3  ;;  %vm86_vm1 = vcmask 130048   ;;  %v419_v5 = vld [vmem:[#allocation8] sm:$0xff]   ;;  %v420_v6 = vld [vmem:[#allocation8 + $0x8] sm:$0xff]   ;;  %v421_v7 = vld [vmem:[#allocation8 + $0x10] sm:$0xff]   ;;  %v532_v30 = vmov 0   ;;  %vm284_vm2 = vcmask 64512  }
  0x3b   :  { %388 = vmatprep.subr.bf16.mxu1 %v530_v1  ;;  %404 = vmatprep.mubr.msk.bf16.mxu1 %vm531_vm0, %v530_v1  ;;  %v422_v8 = vld [vmem:[#allocation8 + $0x18] sm:$0xff]   ;;  %v423_v9 = vld [vmem:[#allocation8 + $0x20] sm:$0xff]   ;;  %v424_v10 = vld [vmem:[#allocation8 + $0x28] sm:$0xff]   ;;  %vm339_vm3 = vcmask 57344  }
  0x3c   :  { %383 = vmatpush3.bf16.msra.mxu0 %v418_v2  ;;  %389 = vmatpush3.bf16.msra.mxu1 %v419_v5  ;;  %v425_v11 = vld [vmem:[#allocation8 + $0x30] sm:$0xff]   ;;  %v426_v12 = vld [vmem:[#allocation8 + $0x38] sm:$0xff]   ;;  %v357_v13 = vld [vmem:[%s658_s2] ss:$0 sm:$0xff]  ;;  %s533_s2 = smov [#allocation9]  }
  0x3d   :  { %390 = vmatprep.subr.bf16.mxu1 %v530_v1  ;;  %v360_v21 = vld [vmem:[%s660_s4] ss:$0 sm:$0xff]  ;;  %s347_s4 = sshll.u32 %s533_s2, 4  ;;  %s348_s4 = int_to_ptr.vmem [resolvable:$true] %s347_s4 }
  0x3e   :  { %v369_v26 = vld [vmem:[%s661_s5] ss:$0 sm:$0xff]  ;;  %s497_s5 = scalar_lea.vmem %s348_s4, 16  ;;  %s501_s19 = scalar_lea.vmem %s348_s4, 32 }
  0x3f   :  { %385 = vmatmul.mubr.msk.bf16.vlgmr.msra.gmra.mrb[0].mxu0 %vm86_vm1, %v70_v4  ;;  %v322_v31 = vld [vmem:[#allocation2] sm:$0x1]  ;;  %p498_p10 = scmp.ne.s32.totalorder %s348_s4, %s497_s5  ;;  %p502_p11 = scmp.lt.s32.totalorder %s348_s4, %s348_s4 }
  0x40   :  { %391 = vmatpush3.bf16.msra.mxu1 %v420_v6  ;;  %p503_p12 = scmp.lt.s32.totalorder %s501_s19, %s497_s5 }
  0x41   :  { %392 = vmatprep.subr.bf16.mxu1 %v530_v1 }
  0x42   :  { %p504_p13 = por %p503_p12, %p502_p11 }
  0x44   :  { %393 = vmatpush3.bf16.msra.mxu1 %v421_v7  ;;  %p505_p0 = pnand %p504_p13, %p498_p10 }
  0x45   :  { %394 = vmatprep.subr.bf16.mxu1 %v530_v1 }
  0x48   :  { %395 = vmatpush3.bf16.msra.mxu1 %v422_v8 }
  0x49   :  { %396 = vmatprep.subr.bf16.mxu1 %v530_v1 }
  0x4c   :  { %397 = vmatpush3.bf16.msra.mxu1 %v423_v9 }
  0x4d   :  { %398 = vmatprep.subr.bf16.mxu1 %v530_v1 }
  0x50   :  { %399 = vmatpush3.bf16.msra.mxu1 %v424_v10 }
  0x51   :  { %400 = vmatprep.subr.bf16.mxu1 %v530_v1 }
  0x54   :  { %401 = vmatpush3.bf16.msra.mxu1 %v425_v11 }
  0x55   :  { %402 = vmatprep.subr.bf16.mxu1 %v530_v1 }
  0x58   :  { %403 = vmatpush3.bf16.msra.mxu1 %v426_v12 }
 0x112   :  { %v124_v14 = vpop.f32.mrb[0].mxu0 }
 0x113   :  { %v125_v15 = vadd.f32 %v357_v13, %v124_v14  ;;  %v386_v16 = vpop.f32.mrb[1].mxu0 }
 0x114   :  { %v127_v17 = vpop.f32.mrb[2].mxu0 }
 0x115   :  { %v130_v18 = vmax.f32 %v125_v15, 0.0  ;;  %v387_v19 = vpop.f32.mrb[3].mxu0 }
 0x117   :  { %v131_v20 = vpack.c.bf16 %v130_v18, %v130_v18  ;;  %v328_v18 = vlaneseq }
 0x119   :  { %405 = vmatmul.mubr.bf16.vlgmr.msra.gmra.mrb[0].mxu1 %v131_v20  ;;  %v329_v20 = vshrl.u32 %v328_v18, 7 }
 0x1ec   :  { %v237_v22 = vpop.f32.mrb[0].mxu1 }
 0x1ed   :  { %v238_v23 = vadd.f32 %v360_v21, %v237_v22  ;;  %v406_v24 = vpop.f32.mrb[1].mxu1  ;;  %v330_v22 = vsub.s32 0, %v329_v20 }
 0x1ee   :  { %v240_v25 = vpop.f32.mrb[2].mxu1 }
 0x1ef   :  { %v243_v27 = vmax.f32 %v238_v23, 0.0  ;;  %v407_v28 = vpop.f32.mrb[3].mxu1 }
 0x1f1   :  { %v251_v29 = vmul.f32 %v369_v26, %v243_v27 }
 0x1f3   :  { %252 = vxpose.xlu0.b32.start.end [1/1] (short) %v251_v29, 128 }
 0x21c   :  { %417 = vset.pattern.permute.xlu0 %v532_v30 }
 0x258   :  { %325 = vperm.xlu0 %417, %v322_v31  }
 0x273   :  { %v268_v32 = vpop.trf.xlu0 }
 0x274   :  { %v285_v38 = vsel %vm284_vm2, %v268_v32, 0.0 }
 0x277   :  { %v269_v33 = vpop.trf.xlu0 }
 0x278   :  { %v286_v39 = vsel %vm284_vm2, %v269_v33, 0.0 }
 0x279   :  { %v287_v41 = vadd.f32 %v286_v39, %v285_v38 }
 0x27b   :  { %v270_v34 = vpop.trf.xlu0 }
 0x27c   :  { %v288_v42 = vsel %vm284_vm2, %v270_v34, 0.0 }
 0x27d   :  { %v289_v44 = vadd.f32 %v288_v42, %v287_v41 }
 0x27f   :  { %v271_v35 = vpop.trf.xlu0 }
 0x280   :  { %v290_v45 = vsel %vm284_vm2, %v271_v35, 0.0 }
 0x281   :  { %v291_v47 = vadd.f32 %v290_v45, %v289_v44 }
 0x283   :  { %v272_v36 = vpop.trf.xlu0 }
 0x284   :  { %v292_v48 = vsel %vm284_vm2, %v272_v36, 0.0 }
 0x285   :  { %v293_v50 = vadd.f32 %v292_v48, %v291_v47 }
 0x287   :  { %v273_v37 = vpop.trf.xlu0 }
 0x288   :  { %v294_v51 = vsel %vm284_vm2, %v273_v37, 0.0 }
 0x289   :  { %v295_v52 = vadd.f32 %v294_v51, %v293_v50 }
 0x28b   :  { %v274_v40 = vpop.trf.xlu0 }
 0x28c   :  { %v296_v54 = vsel %vm284_vm2, %v274_v40, 0.0 }
 0x28d   :  { %v297_v55 = vadd.f32 %v296_v54, %v295_v52 }
 0x28f   :  { %v275_v43 = vpop.trf.xlu0 }
 0x290   :  { %v298_v56 = vsel %vm284_vm2, %v275_v43, 0.0 }
 0x291   :  { %v299_v58 = vadd.f32 %v298_v56, %v297_v55 }
 0x293   :  { %v276_v46 = vpop.trf.xlu0 }
 0x294   :  { %v300_v59 = vsel %vm284_vm2, %v276_v46, 0.0 }
 0x295   :  { %v301_v60 = vadd.f32 %v300_v59, %v299_v58 }
 0x297   :  { %v277_v49 = vpop.trf.xlu0 }
 0x298   :  { %v302_v62 = vsel %vm284_vm2, %v277_v49, 0.0 }
 0x299   :  { %v303_v63 = vadd.f32 %v302_v62, %v301_v60 }
 0x29b   :  { %v278_v53 = vpop.trf.xlu0 }
 0x29c   :  { %v304_v0 = vsel %vm284_vm2, %v278_v53, 0.0 }
 0x29d   :  { %v305_v2 = vadd.f32 %v304_v0, %v303_v63 }
 0x29f   :  { %v279_v57 = vpop.trf.xlu0 }
 0x2a0   :  { %v306_v3 = vsel %vm284_vm2, %v279_v57, 0.0 }
 0x2a1   :  { %v307_v4 = vadd.f32 %v306_v3, %v305_v2 }
 0x2a3   :  { %v280_v61 = vpop.trf.xlu0 }
 0x2a4   :  { %v308_v6 = vsel %vm284_vm2, %v280_v61, 0.0 }
 0x2a5   :  { %v309_v7 = vadd.f32 %v308_v6, %v307_v4 }
 0x2a7   :  { %v281_v1 = vpop.trf.xlu0 }
 0x2a8   :  { %v310_v8 = vsel %vm284_vm2, %v281_v1, 0.0 }
 0x2a9   :  { %v311_v11 = vadd.f32 %v310_v8, %v309_v7 }
 0x2ab   :  { %v282_v5 = vpop.trf.xlu0 }
 0x2ac   :  { %v312_v10 = vsel %vm284_vm2, %v282_v5, 0.0 }
 0x2ad   :  { %v313_v13 = vadd.f32 %v312_v10, %v311_v11 }
 0x2af   :  { %v283_v9 = vpop.trf.xlu0 }
 0x2b0   :  { %v314_v12 = vsel %vm284_vm2, %v283_v9, 0.0 }
 0x2b1   :  { %v315_v14 = vadd.f32 %v314_v12, %v313_v13 }
 0x2b3   :  { %v316_v15 = vrot.slane %v315_v14, 4 }
 0x2b5   :  { %v317_v16 = vadd.f32 %v316_v15, %v315_v14 }
 0x2b7   :  { %v318_v17 = vrot.slane %v317_v16, 2 }
 0x2b9   :  { %v319_v19 = vadd.f32 %v318_v17, %v317_v16 }
 0x2bb   :  { %v320_v21 = vrot.slane %v319_v19, 1 }
 0x2bd   :  { %v321_v24 = vadd.f32 %v320_v21, %v319_v19 }
 0x2d7   :  { %v326_v23 = vpop.permute.xlu0 %325 }
 0x2d8   :  { %v331_v25 = vrot.slane %v326_v23, %v330_v22 }
 0x2da   :  { %v332_v26 = vadd.f32 %v331_v25, %v321_v24 }
 0x2dc   :  { %v370_v27 = vmul.f32 -1.442695, %v332_v26 }
 0x2de   :  { %427 = vpow2.f32 %v370_v27 }
 0x2e8   :  { %v428_v28 = vpop.eup %427 }
 0x2e9   :  { %v336_v29 = vadd.f32 1.0, %v428_v28 }
 0x2eb   :  { %429 = vrcp.f32 %v336_v29 }
 0x2f5   :  { %v430_v30 = vpop.eup %429 }
 0x2f6   :  { %340 = vst.msk [vmem:[#allocation9] sm:$0x1] %vm339_vm3, %v430_v30 }
 0x2f7   :  { %508 = shalt.err (!%p505_p0)
}
 0x2f8   :  { %s509_s22 = scalar_lea.hbm %s663_s7, 16 }
 0x2f9   :  { %p510_p1 = scmp.ne.s32.totalorder %s663_s7, %s509_s22  ;;  %p513_p2 = scmp.lt.u32.totalorder %s509_s22, %s663_s7 }
 0x2fb   :  { %p515_p3 = pnand %p513_p2, %p510_p1 }
 0x2fd   :  { %518 = shalt.err (!%p515_p3)
}
 0x2fe   :  { %350 = dma.vmem_to_hbm [thread:$0]  %s348_s4, 16, %s663_s7, [#allocation5]  }
 0x2ff   :  { %523 = dma.done.wait [#allocation5], 16  }
 0x300   :  { %524 = vsyncadd [#allocation5], 4294967280 }
 0x301   :  { %354 = vsyncpa [#allocation4], 1 }
 0x302   :  { %355 = vsyncpa [#allocation7], 1 }
 0x303   :  { %356 = vsyncpa [#allocation5], 1 }

</bundles_post_ra>
